<compile_context>
chip_gen: v6e
topology: v6e:2x2x1
jax: 0.10.0
libtpu: 0.0.40
codegen_flags: <defaults>
</compile_context>

<pallas_src>
import functools

import jax
import jax.numpy as jnp
from jax.experimental import pallas as pl
from jax.experimental.pallas import tpu as pltpu


def _fd_kernel(x_ref, dy_ref, dx_ref, *, weights, pad_top, pad_left, H, W, acc_dtype):
    """One block of TB flattened images: x_ref is (TB, H*W)."""
    HW = H * W
    x = x_ref[...].astype(acc_dtype)              # no-op when acc_dtype == input dtype

    dy_taps = [(k - pad_top, w) for k, w in enumerate(weights) if w != 0.0]
    dx_taps = [(k - pad_left, w) for k, w in enumerate(weights) if w != 0.0]

    # Boundary masks built in-kernel (no int32 HBM side-stream), hoisted so
    # every tap / iterated shift reuses the same mask objects.
    need_col_last = any(s > 0 for s, _ in dx_taps)
    need_col_first = any(s < 0 for s, _ in dx_taps)
    need_row_last = any(s > 0 for s, _ in dy_taps)
    need_row_first = any(s < 0 for s, _ in dy_taps)

    col_first = col_last = row_first = row_last = None
    if need_col_first or need_col_last or need_row_first or need_row_last:
        flat = jax.lax.broadcasted_iota(jnp.int32, (1, HW), 1)
        if need_col_first or need_col_last:
            if (W & (W - 1)) == 0:                 # W power of two: cheap AND
                col = flat & (W - 1)
            else:
                col = flat % W
            if need_col_first:
                col_first = col == 0
            if need_col_last:
                col_last = col == (W - 1)
        if need_row_first:
            row_first = flat < W
        if need_row_last:
            row_last = flat >= (H - 1) * W

    def col_shift(s):
        # out[., h*W + w] = x[., h*W + clamp(w + s, 0, W-1)]
        if s == 0:
            return x
        y = x
        if s > 0:
            for _ in range(s):
                y = jnp.where(col_last, y, pltpu.roll(y, HW - 1, axis=1))
        else:
            for _ in range(-s):
                y = jnp.where(col_first, y, pltpu.roll(y, 1, axis=1))
        return y

    def row_shift(s):
        # out[., h*W + w] = x[., clamp(h + s, 0, H-1)*W + w]
        if s == 0:
            return x
        y = x
        if s > 0:
            for _ in range(s):
                y = jnp.where(row_last, y, pltpu.roll(y, HW - W, axis=1))
        else:
            for _ in range(-s):
                y = jnp.where(row_first, y, pltpu.roll(y, W, axis=1))
        return y

    def accumulate(taps, shift_fn):
        acc = None
        for s, w in taps:
            term = shift_fn(s)
            if w == 1.0:
                acc = term if acc is None else acc + term
            elif w == -1.0:
                acc = -term if acc is None else acc - term
            else:
                wv = jnp.asarray(w, dtype=acc_dtype)
                acc = wv * term if acc is None else acc + wv * term
        if acc is None:
            acc = jnp.zeros_like(x)
        return acc

    dy_ref[...] = accumulate(dy_taps, row_shift).astype(dy_ref.dtype)
    dx_ref[...] = accumulate(dx_taps, col_shift).astype(dx_ref.dtype)


def _chip_info():
    """Best-effort (parallel TensorCores, physical VMEM bytes) for the default backend."""
    kind = ""
    try:
        kind = (getattr(jax.devices()[0], "device_kind", "") or "").lower()
    except Exception:
        pass
    if "v7" in kind or "tpu7" in kind:
        return 2, 64 << 20            # v7x: 2 TCs/chip, 64 MiB VMEM per TC
    if "v4" in kind or "v5p" in kind:
        return 2, 128 << 20           # megacore parts: grid shards across 2 TCs
    if "v5" in kind or "v6" in kind:
        return 1, 128 << 20           # v5e / v6e: single TC, 128 MiB VMEM
    return 2, 64 << 20                # unknown: conservative VMEM, assume 2 cores


def _pick_block_batch(B, sublane, num_cores, target_tb, fits):
    """Images per grid step (second-to-last block dim)."""
    if B <= sublane:
        return B                      # full-dim block is always layout-legal
    cands = list(range(sublane, B, sublane)) + [B]
    legal = [t for t in cands if fits(t)]
    if not legal:
        # TODO(synk): images this large need row-chunk spatial tiling with a
        # (fs-1)-row halo for dy; fall back to the smallest aligned block.
        return sublane

    def key(t):
        g = -(-B // t)                               # grid length
        return (
            g % num_cores == 0,                      # every TensorCore gets equal work
            B % t == 0,                              # no ragged (padded) tail block
            -abs(t - min(target_tb, B)),             # block bytes near the target
            t,                                       # tie-break toward the bigger block
        )

    return max(legal, key=key)


def finite_difference(x, filter_1d=(-1.0, 1.0), right_bottom=True,
                      target_block_bytes=None):
    """Pallas equivalent of FiniteDifference.forward for NCHW input.

    Returns (dy, dx), each of shape [N, C, H, W].
    """
    # TODO(synk): only padding_mode='replicate' (the module default) is implemented.
    N, C, H, W = x.shape
    weights = tuple(float(w) for w in filter_1d)
    fs = len(weights)

    # Leading-edge pad amounts exactly as in the PyTorch __init__.
    if fs % 2 == 1:
        pad_top = pad_left = (fs - 1) // 2
    elif right_bottom:
        pad_top = pad_left = (fs - 1) // 2
    else:
        pad_top = pad_left = (fs - 1) // 2 + 1

    B, HW = N * C, H * W
    xb = x.reshape(B, HW)             # lane-dense layout: whole image on the lane axis

    # Accumulate in the input dtype when every tap is +/-1 (pure add/sub);
    # only fractional tap weights need f32 accumulation.
    unit_taps = all(w in (0.0, 1.0, -1.0) for w in weights)
    acc_dtype = x.dtype if unit_taps else jnp.float32

    num_cores, phys_vmem = _chip_info()
    itemsize = jnp.dtype(x.dtype).itemsize
    acc_itemsize = jnp.dtype(acc_dtype).itemsize
    sublane = max(8, 32 // itemsize)  # (8,128) f32 / (16,128) bf16 / (32,128) int8 tiles

    if target_block_bytes is None:
        # ~4 MiB/step keeps the ~0.35us step overhead small at v7x HBM speed;
        # 2 MiB is already 4-8 us of DMA per step on v5e/v6e.
        target_block_bytes = (4 << 20) if phys_vmem <= (64 << 20) else (2 << 20)

    img_bytes = HW * itemsize
    target_tb = max(1, int(target_block_bytes) // max(img_bytes, 1))

    # Real VMEM footprint: 3 streams (x, dy, dx) double-buffered in the input
    # dtype plus ~4 live full-block temporaries in the accumulation dtype.
    vmem_cap = min(int(phys_vmem) - (8 << 20), 100 << 20)

    def footprint(tb):
        return 6 * tb * HW * itemsize + 4 * tb * HW * acc_itemsize + (1 << 20)

    tb = _pick_block_batch(B, sublane, num_cores, target_tb,
                           lambda t: footprint(t) <= vmem_cap)
    grid = (pl.cdiv(B, tb),)
    vmem_limit = int(min(max(footprint(tb), 32 << 20), vmem_cap))

    kernel = functools.partial(
        _fd_kernel,
        weights=weights,
        pad_top=pad_top,
        pad_left=pad_left,
        H=H,
        W=W,
        acc_dtype=acc_dtype,
    )

    nnz = sum(1 for w in weights if w != 0.0)
    cost = pl.CostEstimate(
        flops=2 * 2 * max(nnz, 1) * B * HW,          # two outputs, nnz taps each
        transcendentals=0,
        bytes_accessed=3 * B * HW * itemsize,        # read x, write dy + dx
    )

    img_spec = pl.BlockSpec((tb, HW), lambda b: (b, 0))

    dy, dx = pl.pallas_call(
        kernel,
        out_shape=(
            jax.ShapeDtypeStruct((B, HW), x.dtype),
            jax.ShapeDtypeStruct((B, HW), x.dtype),
        ),
        grid_spec=pltpu.PrefetchScalarGridSpec(
            num_scalar_prefetch=0,
            grid=grid,
            in_specs=[img_spec],
            out_specs=[pl.BlockSpec((tb, HW), lambda b: (b, 0)),
                       pl.BlockSpec((tb, HW), lambda b: (b, 0))],
        ),
        compiler_params=pltpu.CompilerParams(
            dimension_semantics=("parallel",),
            vmem_limit_bytes=vmem_limit,
        ),
        cost_estimate=cost,
    )(xb)

    return dy.reshape(N, C, H, W), dx.reshape(N, C, H, W)


def _reference(x, filter_1d=(-1.0, 1.0), right_bottom=True):
    """Pure-JAX reference: replicate pad + depthwise cross-correlation."""
    fs = len(filter_1d)
    if fs % 2 == 1:
        pt = pb = (fs - 1) // 2
        pleft = pr = (fs - 1) // 2
    elif right_bottom:
        pt = pleft = (fs - 1) // 2
        pb = pr = pt + 1
    else:
        pb = pr = (fs - 1) // 2
        pt = pleft = pb + 1
    H, W = x.shape[2], x.shape[3]
    xp_y = jnp.pad(x, ((0, 0), (0, 0), (pt, pb), (0, 0)), mode="edge")
    xp_x = jnp.pad(x, ((0, 0), (0, 0), (0, 0), (pleft, pr)), mode="edge")
    dy = sum(jnp.float32(w) * xp_y[:, :, k:k + H, :] for k, w in enumerate(filter_1d))
    dx = sum(jnp.float32(w) * xp_x[:, :, :, k:k + W] for k, w in enumerate(filter_1d))
    return dy, dx


if __name__ == "__main__":
    key = jax.random.PRNGKey(0)
    k1, k2 = jax.random.split(key)

    # Default module config: 2-tap forward difference (image_gradients).
    N, C, H, W = 2, 4, 16, 16
    x = jax.random.normal(k1, (N, C, H, W), dtype=jnp.float32)
    dy, dx = finite_difference(x)
    dy = jax.block_until_ready(dy)
    dx = jax.block_until_ready(dx)
    dy_ref, dx_ref = _reference(x)
    assert dy.shape == (N, C, H, W) and dx.shape == (N, C, H, W)
    assert jnp.allclose(dy, dy_ref, atol=1e-6)
    assert jnp.allclose(dx, dx_ref, atol=1e-6)

    # Larger batch (possibly multi-block grid) with a 3-tap central-difference filter.
    N2, C2 = 4, 8
    x2 = jax.random.normal(k2, (N2, C2, H, W), dtype=jnp.float32)
    f3 = (-0.5, 0.0, 0.5)
    dy2, dx2 = finite_difference(x2, filter_1d=f3)
    dy2 = jax.block_until_ready(dy2)
    dx2 = jax.block_until_ready(dx2)
    dy2_ref, dx2_ref = _reference(x2, filter_1d=f3)
    assert jnp.allclose(dy2, dy2_ref, atol=1e-6)
    assert jnp.allclose(dx2, dx2_ref, atol=1e-6)

    print("KERNEL_OK")
</pallas_src>

<mosaic_0001>
module attributes {stable_mosaic.version = 11 : i64} {
  func.func @_fd_kernel(%arg0: i32, %arg1: memref<8x256xf32, #tpu.memory_space<vmem>>, %arg2: memref<8x256xf32, #tpu.memory_space<vmem>>, %arg3: memref<8x256xf32, #tpu.memory_space<vmem>>) attributes {dimension_semantics = [#tpu.dimension_semantics<parallel>], iteration_bounds = array<i64: 1>, scalar_prefetch = 0 : i64, scratch_operands = 0 : i64, tpu.core_type = #tpu.core_type<tc>, window_params = [{transform_indices = @transform_0, window_bounds = array<i64: 8, 256>}, {transform_indices = @transform_1, window_bounds = array<i64: 8, 256>}, {transform_indices = @transform_2, window_bounds = array<i64: 8, 256>}]} {
    %c0 = arith.constant 0 : index
    %c0_0 = arith.constant 0 : index
    %0 = vector.load %arg1[%c0, %c0_0] : memref<8x256xf32, #tpu.memory_space<vmem>>, vector<8x256xf32>
    %1 = tpu.iota {dimensions = array<i32: 1>} : vector<1x256xi32>
    %c15_i32 = arith.constant 15 : i32
    %2 = vector.broadcast %c15_i32 : i32 to vector<1x256xi32>
    %3 = arith.andi %1, %2 : vector<1x256xi32>
    %c15_i32_1 = arith.constant 15 : i32
    %4 = vector.broadcast %c15_i32_1 : i32 to vector<1x256xi32>
    %5 = arith.cmpi eq, %3, %4 : vector<1x256xi32>
    %c240_i32 = arith.constant 240 : i32
    %6 = vector.broadcast %c240_i32 : i32 to vector<1x256xi32>
    %7 = arith.cmpi sge, %1, %6 : vector<1x256xi32>
    %cst = arith.constant 0.000000e+00 : f32
    %8 = vector.broadcast %cst : f32 to vector<8x256xf32>
    %9 = arith.subf %8, %0 : vector<8x256xf32>
    %c240_i32_2 = arith.constant 240 : i32
    %10 = tpu.dynamic_rotate %0 by %c240_i32_2 dim 1 : vector<8x256xf32>, i32 -> vector<8x256xf32>
    %11 = vector.shape_cast %7 : vector<1x256xi1> to vector<1x256xi1>
    %12 = vector.broadcast %11 : vector<1x256xi1> to vector<8x256xi1>
    %13 = arith.select %12, %0, %10 : vector<8x256xi1>, vector<8x256xf32>
    %14 = arith.addf %9, %13 : vector<8x256xf32>
    %c0_3 = arith.constant 0 : index
    %c0_4 = arith.constant 0 : index
    %15 = vector.load %arg2[%c0_3, %c0_4] : memref<8x256xf32, #tpu.memory_space<vmem>>, vector<8x256xf32>
    tpu.vector_store %arg2[%c0_3, %c0_4], %14 {strides = array<i32>} : memref<8x256xf32, #tpu.memory_space<vmem>>, vector<8x256xf32>,
    %cst_5 = arith.constant 0.000000e+00 : f32
    %16 = vector.broadcast %cst_5 : f32 to vector<8x256xf32>
    %17 = arith.subf %16, %0 : vector<8x256xf32>
    %c255_i32 = arith.constant 255 : i32
    %18 = tpu.dynamic_rotate %0 by %c255_i32 dim 1 : vector<8x256xf32>, i32 -> vector<8x256xf32>
    %19 = vector.shape_cast %5 : vector<1x256xi1> to vector<1x256xi1>
    %20 = vector.broadcast %19 : vector<1x256xi1> to vector<8x256xi1>
    %21 = arith.select %20, %0, %18 : vector<8x256xi1>, vector<8x256xf32>
    %22 = arith.addf %17, %21 : vector<8x256xf32>
    %c0_6 = arith.constant 0 : index
    %c0_7 = arith.constant 0 : index
    %23 = vector.load %arg3[%c0_6, %c0_7] : memref<8x256xf32, #tpu.memory_space<vmem>>, vector<8x256xf32>
    tpu.vector_store %arg3[%c0_6, %c0_7], %22 {strides = array<i32>} : memref<8x256xf32, #tpu.memory_space<vmem>>, vector<8x256xf32>,
    return
  }
  func.func @transform_0(%arg0: i32) -> (i32, i32) {
    %c0_i32 = arith.constant 0 : i32
    %c0_i32_0 = arith.constant 0 : i32
    return %arg0, %c0_i32 : i32, i32
  }
  func.func @transform_1(%arg0: i32) -> (i32, i32) {
    %c0_i32 = arith.constant 0 : i32
    %c0_i32_0 = arith.constant 0 : i32
    return %arg0, %c0_i32 : i32, i32
  }
  func.func @transform_2(%arg0: i32) -> (i32, i32) {
    %c0_i32 = arith.constant 0 : i32
    %c0_i32_0 = arith.constant 0 : i32
    return %arg0, %c0_i32 : i32, i32
  }
}

</mosaic_0001>

<bundles_post_ra>
// kernel: tpu_custom_call.1
= control target key start
LH: loop header
LB: loop body
LE: loop exit
PB: predicated region body
PF: predicated region fallthrough
CT: control target
= control target key end

     0   :  { %8 = vsyncpa [#allocation3], 0  ;;  %s212_s0 = inlined_call_operand.hbm [shape: f32[8,256], index: 0, kind: input, shape index: {}]   ;;  %s213_s1 = inlined_call_operand.hbm [shape: f32[8,256], index: 1, kind: output, shape index: {0}]   ;;  %s214_s2 = inlined_call_operand.hbm [shape: f32[8,256], index: 2, kind: output, shape index: {1}]  }
   0x1   :  { %9 = vsyncpa [#allocation4], 0 }
   0x2   :  { %10 = vsyncpa [#allocation7], 0  ;;  %s171_s9 = smov [#allocation2]  }
   0x3   :  { %s17_s10 = sshll.u32 %s171_s9, 4  ;;  %s18_s10 = int_to_ptr.vmem [resolvable:$true] %s17_s10 }
   0x4   :  { %s113_s11 = scalar_lea.vmem %s18_s10, 256  ;;  %p118_p1 = scmp.lt.s32.totalorder %s18_s10, %s18_s10 }
   0x5   :  { %p114_p0 = scmp.ne.s32.totalorder %s18_s10, %s113_s11  ;;  %p119_p2 = scmp.lt.s32.totalorder %s113_s11, %s113_s11 }
   0x7   :  { %p120_p3 = por %p119_p2, %p118_p1 }
   0x9   :  { %p121_p4 = pnand %p120_p3, %p114_p0 }
   0xb   :  { %124 = shalt.err (!%p121_p4)
}
   0xc   :  { %20 = dma.hbm_to_vmem [thread:$0]  %s212_s0, 256, %s18_s10, [#allocation3]  }
   0xd   :  { %165 = dma.done.wait [#allocation3], 256  }
   0xe   :  { %166 = vsyncadd [#allocation3], 4294967040  ;;  %v24_v0 = vld [vmem:[#allocation2] sm:$0xff]  ;;  %s172_s14 = smov 127   ;;  %s173_s15 = smov 112   ;;  %v25_v1 = vld [vmem:[#allocation2 + $0x8] sm:$0xff]  ;;  %v26_v2 = vlaneseq }
   0xf   :  { %54 = vrot.lane.b32.xlu1 %v24_v0, %s172_s14  ;;  %37 = vrot.lane.b32.xlu0 %v24_v0, %s173_s15  ;;  %v35_v9 = vsub.f32 0.0, %v24_v0  ;;  %v36_v12 = vsub.f32 0.0, %v25_v1  ;;  %s174_s0 = smov [#allocation5]   ;;  %s175_s17 = smov [#allocation6]  }
  0x10   :  { %v27_v3 = vand.u32 127, %v26_v2  ;;  %s77_s16 = sshll.u32 %s174_s0, 4  ;;  %s87_s18 = sshll.u32 %s175_s17, 4  ;;  %s78_s16 = int_to_ptr.vmem [resolvable:$true] %s77_s16  ;;  %s88_s18 = int_to_ptr.vmem [resolvable:$true] %s87_s18 }
  0x11   :  { %s125_s19 = scalar_lea.vmem %s78_s16, 256  ;;  %p130_p6 = scmp.lt.s32.totalorder %s78_s16, %s78_s16 }
  0x12   :  { %v28_v4 = vadd.s32 128, %v27_v3  ;;  %v29_v5 = vand.u32 15, %v27_v3  ;;  %vm58_vm0 = vcmp.lt.s32.totalorder %v27_v3, 127  ;;  %vm41_vm1 = vcmp.lt.s32.totalorder %v27_v3, 112  ;;  %p126_p5 = scmp.ne.s32.totalorder %s78_s16, %s125_s19  ;;  %p131_p7 = scmp.lt.s32.totalorder %s125_s19, %s125_s19 }
  0x13   :  { %56 = vrot.lane.b32.xlu1 %v25_v1, %s172_s14  ;;  %39 = vrot.lane.b32.xlu0 %v25_v1, %s173_s15 }
  0x14   :  { %v30_v6 = vand.u32 15, %v28_v4  ;;  %vm194_vm2 = vcmp.eq.s32.totalorder %v29_v5, 15  ;;  %vm34_vm4 = vcmp.ge.s32.totalorder %v28_v4, 240  ;;  %p132_p8 = por %p131_p7, %p130_p6 }
  0x16   :  { %vm198_vm3 = vcmp.eq.s32.totalorder %v30_v6, 15  ;;  %p133_p9 = pnand %p132_p8, %p126_p5 }
  0x81   :  { %v55_v7 = vpop.permute.xlu1 %54  ;;  %v38_v8 = vpop.permute.xlu0 %37 }
  0x85   :  { %v57_v13 = vpop.permute.xlu1 %56  ;;  %v40_v14 = vpop.permute.xlu0 %39 }
  0x86   :  { %v59_v15 = vsel %vm58_vm0, %v55_v7, %v57_v13  ;;  %v60_v16 = vsel %vm58_vm0, %v57_v13, %v55_v7  ;;  %v42_v17 = vsel %vm41_vm1, %v38_v8, %v40_v14  ;;  %v43_v18 = vsel %vm41_vm1, %v40_v14, %v38_v8 }
  0x87   :  { %v65_v19 = vsel %vm194_vm2, %v24_v0, %v59_v15  ;;  %v66_v20 = vsel %vm198_vm3, %v25_v1, %v60_v16  ;;  %v49_v21 = vsel %vm34_vm4, %v25_v1, %v43_v18  ;;  %v50_v22 = vadd.f32 %v42_v17, %v35_v9 }
  0x88   :  { %v68_v23 = vadd.f32 %v66_v20, %v36_v12  ;;  %v51_v24 = vadd.f32 %v49_v21, %v36_v12  ;;  %v67_v25 = vadd.f32 %v65_v19, %v35_v9 }
  0x89   :  { %52 = vst [vmem:[#allocation5] sm:$0xff] %v50_v22 }
  0x8a   :  { %70 = vst [vmem:[#allocation6 + $0x8] sm:$0xff] %v68_v23  ;;  %53 = vst [vmem:[#allocation5 + $0x8] sm:$0xff] %v51_v24 }
  0x8b   :  { %69 = vst [vmem:[#allocation6] sm:$0xff] %v67_v25 }
  0x8c   :  { %136 = shalt.err (!%p133_p9)
}
  0x8d   :  { %80 = dma.vmem_to_hbm [thread:$0]  %s78_s16, 256, %s213_s1, [#allocation4]  }
  0x8e   :  { %s145_s22 = scalar_lea.vmem %s88_s18, 256  ;;  %p150_p11 = scmp.lt.s32.totalorder %s88_s18, %s88_s18 }
  0x8f   :  { %p146_p10 = scmp.ne.s32.totalorder %s88_s18, %s145_s22  ;;  %p151_p12 = scmp.lt.s32.totalorder %s145_s22, %s145_s22 }
  0x91   :  { %p152_p13 = por %p151_p12, %p150_p11 }
  0x93   :  { %p153_p0 = pnand %p152_p13, %p146_p10 }
  0x95   :  { %156 = shalt.err (!%p153_p0)
}
  0x96   :  { %90 = dma.vmem_to_hbm [thread:$0]  %s88_s18, 256, %s214_s2, [#allocation7]  }
  0x97   :  { %167 = dma.done.wait [#allocation4], 256  }
  0x98   :  { %168 = vsyncadd [#allocation4], 4294967040 }
  0x99   :  { %169 = dma.done.wait [#allocation7], 256  }
  0x9a   :  { %170 = vsyncadd [#allocation7], 4294967040 }
  0x9b   :  { %97 = vsyncpa [#allocation3], 1 }
  0x9c   :  { %98 = vsyncpa [#allocation4], 1 }
  0x9d   :  { %99 = vsyncpa [#allocation7], 1 }

</bundles_post_ra>
